<compile_context>
chip_gen: v5e
topology: v5e:2x2
jax: 0.10.0
libtpu: 0.0.40
codegen_flags: <defaults>
</compile_context>

<pallas_src>
import math
import jax
import jax.numpy as jnp
from jax.experimental import pallas as pl
from jax.experimental.pallas import tpu as pltpu

d_model = 32
d_k = 16
d_v = 16
n_heads = 4
LN_EPS = 1e-5


def mha_kernel(q_ref, k_ref, v_ref, w_blk_ref, w_o_ref, vecs_ref,
               out_ref, attn_ref):
    B, S, _ = q_ref.shape
    hk = n_heads * d_k
    hv = n_heads * d_v

    # ---- Fused Q/K/V projection: ONE MXU matmul over K = 3*d_model ---------
    q_in = q_ref[...].reshape(B * S, d_model)
    k_in = k_ref[...].reshape(B * S, d_model)
    v_in = v_ref[...].reshape(B * S, d_model)
    qkv_in = jnp.concatenate([q_in, k_in, v_in], axis=-1)     # (B*S, 3*d_model)

    vecs = vecs_ref[...]                                      # (4, 2*hk+hv)
    qkv = jnp.dot(qkv_in, w_blk_ref[...],
                  preferred_element_type=jnp.float32) + vecs[0:1, :]

    # Lane slices of the packed projection; cheap leading-dim reshapes.
    q3 = qkv[:, 0:hk].reshape(B, S, hk)
    k3 = qkv[:, hk:2 * hk].reshape(B, S, hk)
    v3 = qkv[:, 2 * hk:2 * hk + hv].reshape(B, S, hv)

    # ---- Head-batched attention (single score / context einsum) ------------
    def split_heads(x, dh):
        # (B, S, n_heads*dh) -> (B*n_heads, S, dh), batch index = b*n_heads + h
        parts = [x[:, :, h * dh:(h + 1) * dh].reshape(B, 1, S, dh)
                 for h in range(n_heads)]
        return jnp.concatenate(parts, axis=1).reshape(B * n_heads, S, dh)

    q_g = split_heads(q3, d_k)
    k_g = split_heads(k3, d_k)
    v_g = split_heads(v3, d_v)

    scale = 1.0 / math.sqrt(d_k)
    # Contraction on the last axis, single leading batch dim (pure MXU path).
    scores = jnp.einsum('gqd,gkd->gqk', q_g, k_g,
                        preferred_element_type=jnp.float32) * scale
    scores = scores - jnp.max(scores, axis=-1, keepdims=True)
    e = jnp.exp(scores)
    attn_g = e / jnp.sum(e, axis=-1, keepdims=True)           # exact divide

    # Single store, directly in the module's (B, n_heads, S, S) layout.
    attn_ref[...] = attn_g.reshape(B, n_heads, S, S)

    ctx_g = jnp.einsum('gqk,gkd->gqd', attn_g, v_g,
                       preferred_element_type=jnp.float32)    # (B*H, S, d_v)

    # Merge heads back to (B*S, n_heads*d_v) rows for ONE K=hv Wo matmul.
    ctx4 = ctx_g.reshape(B, n_heads, S, d_v)
    ctx = jnp.concatenate([ctx4[:, h] for h in range(n_heads)], axis=-1)
    ctx = ctx.reshape(B * S, hv)

    b_o = vecs[1:2, 0:d_model]
    gamma = vecs[2:3, 0:d_model]
    beta = vecs[3:4, 0:d_model]

    # Output projection + bias + residual(Q), all in f32.
    out = q_in + b_o + jnp.dot(ctx, w_o_ref[...],
                               preferred_element_type=jnp.float32)

    # LayerNorm over d_model (biased variance, torch.nn.LayerNorm semantics).
    mean = jnp.mean(out, axis=-1, keepdims=True)
    var = jnp.mean((out - mean) ** 2, axis=-1, keepdims=True)
    normed = (out - mean) * jax.lax.rsqrt(var + LN_EPS)
    out_ref[...] = (normed * gamma + beta).reshape(B, S, d_model)


def prepare_params(params):
    """One-time packing of the 10 parameter arrays into 3 kernel inputs.

    Hoisted out of the per-call wrapper so the concatenation / padding is not
    re-executed as extra XLA HBM ops before every kernel launch.
    """
    (wq, bq, wk, bk, wv, bv, wo, bo, gamma, beta) = params
    hk, hv = n_heads * d_k, n_heads * d_v
    width = 2 * hk + hv

    # Block-diagonal QKV weight: [q | k | v] rows @ w_blk == [q@Wq | k@Wk | v@Wv]
    w_blk = jnp.zeros((3 * d_model, width), jnp.float32)
    w_blk = w_blk.at[0:d_model, 0:hk].set(wq)
    w_blk = w_blk.at[d_model:2 * d_model, hk:2 * hk].set(wk)
    w_blk = w_blk.at[2 * d_model:, 2 * hk:].set(wv)

    pad = width - d_model
    vecs = jnp.concatenate([
        jnp.concatenate([bq, bk, bv], axis=1),                # (1, width)
        jnp.pad(bo, ((0, 0), (0, pad))),
        jnp.pad(gamma, ((0, 0), (0, pad))),
        jnp.pad(beta, ((0, 0), (0, pad))),
    ], axis=0)                                                # (4, width)
    return (w_blk, wo, vecs)


def multi_head_attention(Q, K, V, prepared):
    w_blk, w_o, vecs = prepared
    B, S, _ = Q.shape
    vmem = pl.BlockSpec(memory_space=pltpu.MemorySpace.VMEM)
    out, attn = pl.pallas_call(
        mha_kernel,
        out_shape=(
            jax.ShapeDtypeStruct((B, S, d_model), jnp.float32),
            jax.ShapeDtypeStruct((B, n_heads, S, S), jnp.float32),
        ),
        in_specs=[vmem] * 6,
        out_specs=(vmem, vmem),
    )(Q, K, V, w_blk, w_o, vecs)
    return out, attn


def init_params(key):
    # Deterministic synthetic weights (nn.Linear-style uniform init),
    # stored transposed from PyTorch, i.e. (in, out).
    ks = jax.random.split(key, 8)

    def linear(kw, kb, fan_in, fan_out):
        bound = 1.0 / math.sqrt(fan_in)
        w = jax.random.uniform(kw, (fan_in, fan_out), jnp.float32, -bound, bound)
        b = jax.random.uniform(kb, (1, fan_out), jnp.float32, -bound, bound)
        return w, b

    wq, bq = linear(ks[0], ks[1], d_model, d_k * n_heads)
    wk, bk = linear(ks[2], ks[3], d_model, d_k * n_heads)
    wv, bv = linear(ks[4], ks[5], d_model, d_v * n_heads)
    wo, bo = linear(ks[6], ks[7], n_heads * d_v, d_model)
    gamma = jnp.ones((1, d_model), jnp.float32)
    beta = jnp.zeros((1, d_model), jnp.float32)
    return (wq, bq, wk, bk, wv, bv, wo, bo, gamma, beta)


def reference(Q, K, V, params):
    # Pure-JAX reference for a sanity check.
    (wq, bq, wk, bk, wv, bv, wo, bo, gamma, beta) = params
    B, S, _ = Q.shape
    q = (Q @ wq + bq).reshape(B, S, n_heads, d_k).transpose(0, 2, 1, 3)
    k = (K @ wk + bk).reshape(B, S, n_heads, d_k).transpose(0, 2, 1, 3)
    v = (V @ wv + bv).reshape(B, S, n_heads, d_v).transpose(0, 2, 1, 3)
    scores = jnp.einsum('bhqd,bhkd->bhqk', q, k) / math.sqrt(d_k)
    attn = jax.nn.softmax(scores, axis=-1)
    ctx = jnp.einsum('bhqk,bhkd->bhqd', attn, v)
    ctx = ctx.transpose(0, 2, 1, 3).reshape(B, S, n_heads * d_v)
    out = ctx @ wo + bo + Q
    mu = out.mean(-1, keepdims=True)
    var = ((out - mu) ** 2).mean(-1, keepdims=True)
    return (out - mu) / jnp.sqrt(var + LN_EPS) * gamma + beta, attn


if __name__ == "__main__":
    key = jax.random.PRNGKey(0)
    k_p, k_q, k_k, k_v = jax.random.split(key, 4)

    B, S = 2, 8
    params = init_params(k_p)
    prepared = prepare_params(params)          # one-time packing (hoisted)
    Q = jax.random.normal(k_q, (B, S, d_model), jnp.float32)
    K = jax.random.normal(k_k, (B, S, d_model), jnp.float32)
    V = jax.random.normal(k_v, (B, S, d_model), jnp.float32)

    mha = jax.jit(multi_head_attention)
    out, attn = mha(Q, K, V, prepared)
    jax.block_until_ready((out, attn))

    ref_out, ref_attn = reference(Q, K, V, params)
    assert out.shape == (B, S, d_model)
    assert attn.shape == (B, n_heads, S, S)
    # Kernel softmax now uses an exact divide; remaining tolerance covers the
    # pure-JAX reference's default (reduced-precision) TPU matmul path.
    assert jnp.allclose(out, ref_out, atol=1e-2, rtol=1e-2)
    assert jnp.allclose(attn, ref_attn, atol=5e-3, rtol=5e-3)

    print("KERNEL_OK")
</pallas_src>

<mosaic_0001>
module attributes {stable_mosaic.version = 11 : i64} {
  func.func @mha_kernel(%arg0: memref<2x8x32xf32, #tpu.memory_space<vmem>>, %arg1: memref<2x8x32xf32, #tpu.memory_space<vmem>>, %arg2: memref<2x8x32xf32, #tpu.memory_space<vmem>>, %arg3: memref<96x192xf32, #tpu.memory_space<vmem>>, %arg4: memref<64x32xf32, #tpu.memory_space<vmem>>, %arg5: memref<4x192xf32, #tpu.memory_space<vmem>>, %arg6: memref<2x8x32xf32, #tpu.memory_space<vmem>>, %arg7: memref<2x4x8x8xf32, #tpu.memory_space<vmem>>) attributes {dimension_semantics = [], scalar_prefetch = 0 : i64, scratch_operands = 0 : i64, tpu.core_type = #tpu.core_type<tc>} {
    %c0 = arith.constant 0 : index
    %c0_0 = arith.constant 0 : index
    %c0_1 = arith.constant 0 : index
    %0 = vector.load %arg0[%c0, %c0_0, %c0_1] : memref<2x8x32xf32, #tpu.memory_space<vmem>>, vector<2x8x32xf32>
    %1 = vector.shape_cast %0 : vector<2x8x32xf32> to vector<16x32xf32>
    %c0_2 = arith.constant 0 : index
    %c0_3 = arith.constant 0 : index
    %c0_4 = arith.constant 0 : index
    %2 = vector.load %arg1[%c0_2, %c0_3, %c0_4] : memref<2x8x32xf32, #tpu.memory_space<vmem>>, vector<2x8x32xf32>
    %3 = vector.shape_cast %2 : vector<2x8x32xf32> to vector<16x32xf32>
    %c0_5 = arith.constant 0 : index
    %c0_6 = arith.constant 0 : index
    %c0_7 = arith.constant 0 : index
    %4 = vector.load %arg2[%c0_5, %c0_6, %c0_7] : memref<2x8x32xf32, #tpu.memory_space<vmem>>, vector<2x8x32xf32>
    %5 = vector.shape_cast %4 : vector<2x8x32xf32> to vector<16x32xf32>
    %6 = tpu.concatenate %1, %3, %5 in 1 : vector<16x32xf32>, vector<16x32xf32>, vector<16x32xf32> -> vector<16x96xf32>
    %c0_8 = arith.constant 0 : index
    %c0_9 = arith.constant 0 : index
    %7 = vector.load %arg5[%c0_8, %c0_9] : memref<4x192xf32, #tpu.memory_space<vmem>>, vector<4x192xf32>
    %c0_10 = arith.constant 0 : index
    %c0_11 = arith.constant 0 : index
    %8 = vector.load %arg3[%c0_10, %c0_11] : memref<96x192xf32, #tpu.memory_space<vmem>>, vector<96x192xf32>
    %cst = arith.constant dense<0.000000e+00> : vector<16x192xf32>
    %9 = tpu.matmul %6, %8, %cst {dimension_numbers = #tpu.dot_dimension_numbers<[1], [0], [0], [1], [0, 0, 1, 1], [], []>} : vector<16x96xf32>, vector<96x192xf32>, vector<16x192xf32> -> vector<16x192xf32>
    %10 = vector.extract_strided_slice %7 {offsets = [0, 0], sizes = [1, 192], strides = [1, 1]} : vector<4x192xf32> to vector<1x192xf32>
    %11 = vector.broadcast %10 : vector<1x192xf32> to vector<16x192xf32>
    %12 = arith.addf %9, %11 : vector<16x192xf32>
    %13 = vector.extract_strided_slice %12 {offsets = [0, 0], sizes = [16, 64], strides = [1, 1]} : vector<16x192xf32> to vector<16x64xf32>
    %14 = vector.shape_cast %13 : vector<16x64xf32> to vector<2x8x64xf32>
    %15 = vector.extract_strided_slice %12 {offsets = [0, 64], sizes = [16, 64], strides = [1, 1]} : vector<16x192xf32> to vector<16x64xf32>
    %16 = vector.shape_cast %15 : vector<16x64xf32> to vector<2x8x64xf32>
    %17 = vector.extract_strided_slice %12 {offsets = [0, 128], sizes = [16, 64], strides = [1, 1]} : vector<16x192xf32> to vector<16x64xf32>
    %18 = vector.shape_cast %17 : vector<16x64xf32> to vector<2x8x64xf32>
    %19 = vector.extract_strided_slice %14 {offsets = [0, 0, 0], sizes = [2, 8, 16], strides = [1, 1, 1]} : vector<2x8x64xf32> to vector<2x8x16xf32>
    %20 = vector.shape_cast %19 : vector<2x8x16xf32> to vector<2x1x8x16xf32>
    %21 = vector.extract_strided_slice %14 {offsets = [0, 0, 16], sizes = [2, 8, 16], strides = [1, 1, 1]} : vector<2x8x64xf32> to vector<2x8x16xf32>
    %22 = vector.shape_cast %21 : vector<2x8x16xf32> to vector<2x1x8x16xf32>
    %23 = vector.extract_strided_slice %14 {offsets = [0, 0, 32], sizes = [2, 8, 16], strides = [1, 1, 1]} : vector<2x8x64xf32> to vector<2x8x16xf32>
    %24 = vector.shape_cast %23 : vector<2x8x16xf32> to vector<2x1x8x16xf32>
    %25 = vector.extract_strided_slice %14 {offsets = [0, 0, 48], sizes = [2, 8, 16], strides = [1, 1, 1]} : vector<2x8x64xf32> to vector<2x8x16xf32>
    %26 = vector.shape_cast %25 : vector<2x8x16xf32> to vector<2x1x8x16xf32>
    %27 = tpu.concatenate %20, %22, %24, %26 in 1 : vector<2x1x8x16xf32>, vector<2x1x8x16xf32>, vector<2x1x8x16xf32>, vector<2x1x8x16xf32> -> vector<2x4x8x16xf32>
    %28 = vector.shape_cast %27 : vector<2x4x8x16xf32> to vector<8x8x16xf32>
    %29 = vector.extract_strided_slice %16 {offsets = [0, 0, 0], sizes = [2, 8, 16], strides = [1, 1, 1]} : vector<2x8x64xf32> to vector<2x8x16xf32>
    %30 = vector.shape_cast %29 : vector<2x8x16xf32> to vector<2x1x8x16xf32>
    %31 = vector.extract_strided_slice %16 {offsets = [0, 0, 16], sizes = [2, 8, 16], strides = [1, 1, 1]} : vector<2x8x64xf32> to vector<2x8x16xf32>
    %32 = vector.shape_cast %31 : vector<2x8x16xf32> to vector<2x1x8x16xf32>
    %33 = vector.extract_strided_slice %16 {offsets = [0, 0, 32], sizes = [2, 8, 16], strides = [1, 1, 1]} : vector<2x8x64xf32> to vector<2x8x16xf32>
    %34 = vector.shape_cast %33 : vector<2x8x16xf32> to vector<2x1x8x16xf32>
    %35 = vector.extract_strided_slice %16 {offsets = [0, 0, 48], sizes = [2, 8, 16], strides = [1, 1, 1]} : vector<2x8x64xf32> to vector<2x8x16xf32>
    %36 = vector.shape_cast %35 : vector<2x8x16xf32> to vector<2x1x8x16xf32>
    %37 = tpu.concatenate %30, %32, %34, %36 in 1 : vector<2x1x8x16xf32>, vector<2x1x8x16xf32>, vector<2x1x8x16xf32>, vector<2x1x8x16xf32> -> vector<2x4x8x16xf32>
    %38 = vector.shape_cast %37 : vector<2x4x8x16xf32> to vector<8x8x16xf32>
    %39 = vector.extract_strided_slice %18 {offsets = [0, 0, 0], sizes = [2, 8, 16], strides = [1, 1, 1]} : vector<2x8x64xf32> to vector<2x8x16xf32>
    %40 = vector.shape_cast %39 : vector<2x8x16xf32> to vector<2x1x8x16xf32>
    %41 = vector.extract_strided_slice %18 {offsets = [0, 0, 16], sizes = [2, 8, 16], strides = [1, 1, 1]} : vector<2x8x64xf32> to vector<2x8x16xf32>
    %42 = vector.shape_cast %41 : vector<2x8x16xf32> to vector<2x1x8x16xf32>
    %43 = vector.extract_strided_slice %18 {offsets = [0, 0, 32], sizes = [2, 8, 16], strides = [1, 1, 1]} : vector<2x8x64xf32> to vector<2x8x16xf32>
    %44 = vector.shape_cast %43 : vector<2x8x16xf32> to vector<2x1x8x16xf32>
    %45 = vector.extract_strided_slice %18 {offsets = [0, 0, 48], sizes = [2, 8, 16], strides = [1, 1, 1]} : vector<2x8x64xf32> to vector<2x8x16xf32>
    %46 = vector.shape_cast %45 : vector<2x8x16xf32> to vector<2x1x8x16xf32>
    %47 = tpu.concatenate %40, %42, %44, %46 in 1 : vector<2x1x8x16xf32>, vector<2x1x8x16xf32>, vector<2x1x8x16xf32>, vector<2x1x8x16xf32> -> vector<2x4x8x16xf32>
    %48 = vector.shape_cast %47 : vector<2x4x8x16xf32> to vector<8x8x16xf32>
    "tpu.trace_start"() <{level = 10 : i32, message = "gqd,gkd->gqk"}> : () -> ()
    %cst_12 = arith.constant dense<0.000000e+00> : vector<8x8x8xf32>
    %49 = tpu.matmul %28, %38, %cst_12 {dimension_numbers = #tpu.dot_dimension_numbers<[2], [2], [1], [1], [0, 0, 0, 1, 1, 1], [0], [0]>} : vector<8x8x16xf32>, vector<8x8x16xf32>, vector<8x8x8xf32> -> vector<8x8x8xf32>
    "tpu.trace_stop"() : () -> ()
    %cst_13 = arith.constant 2.500000e-01 : f32
    %50 = vector.broadcast %cst_13 : f32 to vector<8x8x8xf32>
    %51 = arith.mulf %49, %50 : vector<8x8x8xf32>
    %cst_14 = arith.constant dense<0xFF800000> : vector<8x8xf32>
    %52 = vector.multi_reduction <maximumf>, %51, %cst_14 [2] : vector<8x8x8xf32> to vector<8x8xf32>
    %53 = vector.shape_cast %52 : vector<8x8xf32> to vector<8x8x1xf32>
    %54 = vector.broadcast %53 : vector<8x8x1xf32> to vector<8x8x8xf32>
    %55 = arith.subf %51, %54 : vector<8x8x8xf32>
    %56 = math.exp %55 : vector<8x8x8xf32>
    %cst_15 = arith.constant dense<0.000000e+00> : vector<8x8xf32>
    %57 = vector.multi_reduction <add>, %56, %cst_15 [2] : vector<8x8x8xf32> to vector<8x8xf32>
    %58 = vector.shape_cast %57 : vector<8x8xf32> to vector<8x8x1xf32>
    %59 = vector.broadcast %58 : vector<8x8x1xf32> to vector<8x8x8xf32>
    %60 = arith.divf %56, %59 : vector<8x8x8xf32>
    %61 = vector.shape_cast %60 : vector<8x8x8xf32> to vector<2x4x8x8xf32>
    %c0_16 = arith.constant 0 : index
    %c0_17 = arith.constant 0 : index
    %c0_18 = arith.constant 0 : index
    %c0_19 = arith.constant 0 : index
    %62 = vector.load %arg7[%c0_16, %c0_17, %c0_18, %c0_19] : memref<2x4x8x8xf32, #tpu.memory_space<vmem>>, vector<2x4x8x8xf32>
    tpu.vector_store %arg7[%c0_16, %c0_17, %c0_18, %c0_19], %61 {strides = array<i32>} : memref<2x4x8x8xf32, #tpu.memory_space<vmem>>, vector<2x4x8x8xf32>,
    "tpu.trace_start"() <{level = 10 : i32, message = "gqk,gkd->gqd"}> : () -> ()
    %cst_20 = arith.constant dense<0.000000e+00> : vector<8x8x16xf32>
    %63 = tpu.matmul %60, %48, %cst_20 {dimension_numbers = #tpu.dot_dimension_numbers<[2], [1], [1], [2], [0, 0, 0, 1, 1, 2], [0], [0]>} : vector<8x8x8xf32>, vector<8x8x16xf32>, vector<8x8x16xf32> -> vector<8x8x16xf32>
    "tpu.trace_stop"() : () -> ()
    %64 = vector.shape_cast %63 : vector<8x8x16xf32> to vector<2x4x8x16xf32>
    %65 = vector.extract_strided_slice %64 {offsets = [0, 0, 0, 0], sizes = [2, 1, 8, 16], strides = [1, 1, 1, 1]} : vector<2x4x8x16xf32> to vector<2x1x8x16xf32>
    %66 = vector.shape_cast %65 : vector<2x1x8x16xf32> to vector<2x8x16xf32>
    %67 = vector.extract_strided_slice %64 {offsets = [0, 1, 0, 0], sizes = [2, 1, 8, 16], strides = [1, 1, 1, 1]} : vector<2x4x8x16xf32> to vector<2x1x8x16xf32>
    %68 = vector.shape_cast %67 : vector<2x1x8x16xf32> to vector<2x8x16xf32>
    %69 = vector.extract_strided_slice %64 {offsets = [0, 2, 0, 0], sizes = [2, 1, 8, 16], strides = [1, 1, 1, 1]} : vector<2x4x8x16xf32> to vector<2x1x8x16xf32>
    %70 = vector.shape_cast %69 : vector<2x1x8x16xf32> to vector<2x8x16xf32>
    %71 = vector.extract_strided_slice %64 {offsets = [0, 3, 0, 0], sizes = [2, 1, 8, 16], strides = [1, 1, 1, 1]} : vector<2x4x8x16xf32> to vector<2x1x8x16xf32>
    %72 = vector.shape_cast %71 : vector<2x1x8x16xf32> to vector<2x8x16xf32>
    %73 = tpu.concatenate %66, %68, %70, %72 in 2 : vector<2x8x16xf32>, vector<2x8x16xf32>, vector<2x8x16xf32>, vector<2x8x16xf32> -> vector<2x8x64xf32>
    %74 = vector.shape_cast %73 : vector<2x8x64xf32> to vector<16x64xf32>
    %75 = vector.extract_strided_slice %7 {offsets = [1, 0], sizes = [1, 32], strides = [1, 1]} : vector<4x192xf32> to vector<1x32xf32>
    %76 = vector.extract_strided_slice %7 {offsets = [2, 0], sizes = [1, 32], strides = [1, 1]} : vector<4x192xf32> to vector<1x32xf32>
    %77 = vector.extract_strided_slice %7 {offsets = [3, 0], sizes = [1, 32], strides = [1, 1]} : vector<4x192xf32> to vector<1x32xf32>
    %78 = vector.broadcast %75 : vector<1x32xf32> to vector<16x32xf32>
    %79 = arith.addf %1, %78 : vector<16x32xf32>
    %c0_21 = arith.constant 0 : index
    %c0_22 = arith.constant 0 : index
    %80 = vector.load %arg4[%c0_21, %c0_22] : memref<64x32xf32, #tpu.memory_space<vmem>>, vector<64x32xf32>
    %cst_23 = arith.constant dense<0.000000e+00> : vector<16x32xf32>
    %81 = tpu.matmul %74, %80, %cst_23 {dimension_numbers = #tpu.dot_dimension_numbers<[1], [0], [0], [1], [0, 0, 1, 1], [], []>} : vector<16x64xf32>, vector<64x32xf32>, vector<16x32xf32> -> vector<16x32xf32>
    %82 = arith.addf %79, %81 : vector<16x32xf32>
    %cst_24 = arith.constant dense<0.000000e+00> : vector<16xf32>
    %83 = vector.multi_reduction <add>, %82, %cst_24 [1] : vector<16x32xf32> to vector<16xf32>
    %84 = vector.shape_cast %83 : vector<16xf32> to vector<16x1xf32>
    %cst_25 = arith.constant 3.200000e+01 : f32
    %85 = vector.broadcast %cst_25 : f32 to vector<16x1xf32>
    %86 = arith.divf %84, %85 : vector<16x1xf32>
    %87 = vector.broadcast %86 : vector<16x1xf32> to vector<16x32xf32>
    %88 = arith.subf %82, %87 : vector<16x32xf32>
    %89 = arith.mulf %88, %88 : vector<16x32xf32>
    %cst_26 = arith.constant dense<0.000000e+00> : vector<16xf32>
    %90 = vector.multi_reduction <add>, %89, %cst_26 [1] : vector<16x32xf32> to vector<16xf32>
    %91 = vector.shape_cast %90 : vector<16xf32> to vector<16x1xf32>
    %cst_27 = arith.constant 3.200000e+01 : f32
    %92 = vector.broadcast %cst_27 : f32 to vector<16x1xf32>
    %93 = arith.divf %91, %92 : vector<16x1xf32>
    %94 = vector.broadcast %86 : vector<16x1xf32> to vector<16x32xf32>
    %95 = arith.subf %82, %94 : vector<16x32xf32>
    %cst_28 = arith.constant 9.99999974E-6 : f32
    %96 = vector.broadcast %cst_28 : f32 to vector<16x1xf32>
    %97 = arith.addf %93, %96 : vector<16x1xf32>
    %98 = math.rsqrt %97 : vector<16x1xf32>
    %99 = vector.broadcast %98 : vector<16x1xf32> to vector<16x32xf32>
    %100 = arith.mulf %95, %99 : vector<16x32xf32>
    %101 = vector.broadcast %76 : vector<1x32xf32> to vector<16x32xf32>
    %102 = arith.mulf %100, %101 : vector<16x32xf32>
    %103 = vector.broadcast %77 : vector<1x32xf32> to vector<16x32xf32>
    %104 = arith.addf %102, %103 : vector<16x32xf32>
    %105 = vector.shape_cast %104 : vector<16x32xf32> to vector<2x8x32xf32>
    %c0_29 = arith.constant 0 : index
    %c0_30 = arith.constant 0 : index
    %c0_31 = arith.constant 0 : index
    %106 = vector.load %arg6[%c0_29, %c0_30, %c0_31] : memref<2x8x32xf32, #tpu.memory_space<vmem>>, vector<2x8x32xf32>
    tpu.vector_store %arg6[%c0_29, %c0_30, %c0_31], %105 {strides = array<i32>} : memref<2x8x32xf32, #tpu.memory_space<vmem>>, vector<2x8x32xf32>,
    return
  }
}

</mosaic_0001>

<bundles_post_ra>
// kernel: multi_head_attention.1
= control target key start
LH: loop header
LB: loop body
LE: loop exit
PB: predicated region body
PF: predicated region fallthrough
CT: control target
= control target key end

     0   :  { %13 = vsyncpa [#allocation3], 0  ;;  %s1410_s0 = inlined_call_operand.vmem [shape: f32[2,8,32], index: 0, kind: input, shape index: {}]   ;;  %s1411_s1 = inlined_call_operand.vmem [shape: f32[2,8,32], index: 1, kind: input, shape index: {}]   ;;  %s1412_s2 = inlined_call_operand.vmem [shape: f32[2,8,32], index: 2, kind: input, shape index: {}]   ;;  %s1413_s3 = inlined_call_operand.hbm [shape: f32[96,192], index: 3, kind: input, shape index: {}]   ;;  %s1414_s4 = inlined_call_operand.vmem [shape: f32[64,32], index: 4, kind: input, shape index: {}]   ;;  %s1415_s5 = inlined_call_operand.vmem [shape: f32[4,192], index: 5, kind: input, shape index: {}]   ;;  %s1416_s6 = inlined_call_operand.hbm [shape: f32[2,8,32], index: 6, kind: output, shape index: {0}]   ;;  %s1417_s7 = inlined_call_operand.hbm [shape: f32[2,4,8,8], index: 7, kind: output, shape index: {1}]  }
   0x1   :  { %14 = vsyncpa [#allocation4], 0 }
   0x2   :  { %15 = vsyncpa [#allocation7], 0  ;;  %s26_s26 = sshll.u32 %s1413_s3, 4  ;;  %s1136_s27 = smov [#allocation2]   ;;  %s27_s26 = int_to_ptr.hbm [resolvable:$true] %s26_s26 }
   0x3   :  { %s28_s28 = sshll.u32 %s1136_s27, 4  ;;  %s1137_s29 = smov 256   ;;  %s29_s28 = int_to_ptr.vmem [resolvable:$true] %s28_s28 }
   0x4   :  { %s1138_s30 = smov 16  }
   0x5   :  { %34 = dma.hbm_to_vmem [thread:$0]  %s27_s26, 3072, %s29_s28, [#allocation3], %s1137_s29, %s1137_s29, %s1138_s30  }
   0x6   :  { %1130 = dma.done.wait [#allocation3], 3072  }
   0x7   :  { %1131 = vsyncadd [#allocation3], 4294964224  ;;  %v45_v0 = vld [vmem:[%s1411_s1] sm:$0xff]  ;;  %v46_v1 = vld [vmem:[%s1411_s1 + $0x8] sm:$0xff]  ;;  %s1139_s12 = smov 32   ;;  %s1140_s15 = smov 64  }
   0x8   :  { %51 = vrot.lane.b32.xlu0 %v45_v0, %s1139_s12  ;;  %53 = vrot.lane.b32.xlu1 %v46_v1, %s1139_s12  ;;  %v94_v2 = vld [vmem:[#allocation2 + $0xb0] sm:$0xff]  ;;  %v95_v3 = vld [vmem:[#allocation2 + $0xb8] sm:$0xff]  ;;  %v92_v4 = vld [vmem:[#allocation2 + $0xa0] sm:$0xff]  ;;  %vm65_vm0 = vcmask 261120   ;;  %vm68_vm1 = vcmask 523264   ;;  %vm103_vm2 = vcmask 785408  }
   0x9   :  { %114 = vmatpush.msra.mxu0 %v94_v2  ;;  %137 = vmatpush.msra.mxu1 %v95_v3  ;;  %v93_v5 = vld [vmem:[#allocation2 + $0xa8] sm:$0xff]  ;;  %v90_v6 = vld [vmem:[#allocation2 + $0x90] sm:$0xff]  ;;  %v91_v7 = vld [vmem:[#allocation2 + $0x98] sm:$0xff]  ;;  %s1142_s21 = smov 112   ;;  %s1143_s22 = smov 80   ;;  %vm192_vm3 = vcmask 130048  }
   0xa   :  { %v88_v8 = vld [vmem:[#allocation2 + $0x80] sm:$0xff]  ;;  %v89_v9 = vld [vmem:[#allocation2 + $0x88] sm:$0xff]  ;;  %v86_v12 = vld [vmem:[#allocation2 + $0x70] sm:$0xff]  ;;  %vm407_vm4 = vcmask 64512   ;;  %s943_s16 = sshll.u32 %s1417_s7, 4  ;;  %s1147_s17 = smov 128   ;;  %s944_s16 = int_to_ptr.hbm [resolvable:$true] %s943_s16 }
   0xb   :  { %115 = vmatpush.msra.mxu0 %v92_v4  ;;  %138 = vmatpush.msra.mxu1 %v93_v5  ;;  %v47_v10 = vld [vmem:[%s1412_s2] sm:$0xff]  ;;  %v48_v11 = vld [vmem:[%s1412_s2 + $0x8] sm:$0xff]  ;;  %v87_v13 = vld [vmem:[#allocation2 + $0x78] sm:$0xff]  ;;  %s1148_s18 = smov 8   ;;  %s1149_s7 = smov [#allocation5]  }
   0xc   :  { %v84_v14 = vld [vmem:[#allocation2 + $0x60] sm:$0xff]  ;;  %v85_v15 = vld [vmem:[#allocation2 + $0x68] sm:$0xff]  ;;  %v82_v16 = vld [vmem:[#allocation2 + $0x50] sm:$0xff]  ;;  %s928_s19 = sshll.u32 %s1149_s7, 4  ;;  %s929_s19 = int_to_ptr.vmem [resolvable:$true] %s928_s19 }
   0xd   :  { %116 = vmatpush.msra.mxu0 %v90_v6  ;;  %139 = vmatpush.msra.mxu1 %v91_v7  ;;  %v83_v17 = vld [vmem:[#allocation2 + $0x58] sm:$0xff]  ;;  %v80_v18 = vld [vmem:[#allocation2 + $0x40] sm:$0xff]  ;;  %v81_v19 = vld [vmem:[#allocation2 + $0x48] sm:$0xff] }
   0xe   :  { %v78_v20 = vld [vmem:[#allocation2 + $0x30] sm:$0xff]  ;;  %v79_v21 = vld [vmem:[#allocation2 + $0x38] sm:$0xff]  ;;  %v76_v22 = vld [vmem:[#allocation2 + $0x20] sm:$0xff] }
   0xf   :  { %117 = vmatpush.msra.mxu0 %v88_v8  ;;  %140 = vmatpush.msra.mxu1 %v89_v9  ;;  %v77_v23 = vld [vmem:[#allocation2 + $0x28] sm:$0xff]  ;;  %v74_v24 = vld [vmem:[#allocation2 + $0x10] sm:$0xff]  ;;  %v75_v25 = vld [vmem:[#allocation2 + $0x18] sm:$0xff] }
  0x10   :  { %59 = vrot.lane.b32.xlu0 %v47_v10, %s1140_s15  ;;  %61 = vrot.lane.b32.xlu1 %v48_v11, %s1140_s15  ;;  %v72_v26 = vld [vmem:[#allocation2] sm:$0xff]  ;;  %v73_v27 = vld [vmem:[#allocation2 + $0x8] sm:$0xff] }
  0x11   :  { %118 = vmatpush.msra.mxu0 %v86_v12  ;;  %141 = vmatpush.msra.mxu1 %v87_v13  ;;  %v1213_v30 = vld [vmem:[%s1410_s0] sm:$0xff]  ;;  %v1220_v33 = vld [vmem:[%s1410_s0 + $0x8] sm:$0xff]  ;;  %s1141_s0 = smov 96  }
  0x12   :  { %v1229_v38 = vld [vmem:[%s1415_s5] sm:$0xff]  ;;  %s1144_s5 = smov 48  }
  0x13   :  { %119 = vmatpush.msra.mxu0 %v84_v14  ;;  %142 = vmatpush.msra.mxu1 %v85_v15  ;;  %v97_v39 = vperm.slane %v1229_v38, 0  ;;  %v98_v56 = vperm.slane %v1229_v38, 4 }
  0x15   :  { %120 = vmatpush.msra.mxu0 %v82_v16  ;;  %143 = vmatpush.msra.mxu1 %v83_v17  ;;  %v101_v40 = vperm.slane %v97_v39, 0  ;;  %v102_v58 = vperm.slane %v98_v56, 0 }
  0x17   :  { %121 = vmatpush.msra.mxu0 %v80_v18  ;;  %144 = vmatpush.msra.mxu1 %v81_v19 }
  0x19   :  { %122 = vmatpush.msra.mxu0 %v78_v20  ;;  %145 = vmatpush.msra.mxu1 %v79_v21 }
  0x1b   :  { %123 = vmatpush.msra.mxu0 %v76_v22  ;;  %146 = vmatpush.msra.mxu1 %v77_v23 }
  0x1d   :  { %124 = vmatpush.msra.mxu0 %v74_v24  ;;  %147 = vmatpush.msra.mxu1 %v75_v25 }
  0x1f   :  { %125 = vmatpush.msra.mxu0 %v72_v26  ;;  %148 = vmatpush.msra.mxu1 %v73_v27 }
  0x7a   :  { %v52_v28 = vpop.permute.xlu0 %51  ;;  %v54_v29 = vpop.permute.xlu1 %53 }
  0x7b   :  { %v66_v31 = vsel %vm65_vm0, %v1213_v30, %v52_v28  ;;  %v67_v35 = vsel %vm65_vm0, %v1220_v33, %v54_v29 }
  0x82   :  { %v60_v32 = vpop.permute.xlu0 %59  ;;  %v62_v36 = vpop.permute.xlu1 %61 }
  0x83   :  { %v69_v34 = vsel %vm68_vm1, %v66_v31, %v60_v32  ;;  %v70_v37 = vsel %vm68_vm1, %v67_v35, %v62_v36 }
  0x84   :  { %961 = vmatmul.msk.f32.vlgmr.msra.gmra.mxu0 %vm103_vm2, %v69_v34  ;;  %963 = vmatmul.msk.f32.vlgmr.msra.gmra.mxu1 %vm103_vm2, %v69_v34 }
  0x8c   :  { %962 = vmatmul.msk.f32.gmra.mxu0 %vm103_vm2, %v70_v37  ;;  %964 = vmatmul.msk.f32.gmra.mxu1 %vm103_vm2, %v70_v37 }
 0x101   :  { %v127_v41 = vpop.f32.mrf.mxu0  ;;  %v150_v54 = vpop.f32.mrf.mxu1 }
 0x102   :  { %v128_v42 = vadd.f32 %v127_v41, %v101_v40  ;;  %v1256_v60 = vadd.f32 %v150_v54, %v102_v58 }
 0x104   :  { %162 = vrot.lane.b32.xlu1 %v128_v42, %s1141_s0  ;;  %158 = vrot.lane.b32.xlu2 %v128_v42, %s1142_s21 }
 0x109   :  { %v130_v43 = vpop.f32.mrf.mxu0  ;;  %v153_v61 = vpop.f32.mrf.mxu1 }
 0x10a   :  { %v131_v44 = vadd.f32 %v130_v43, %v101_v40  ;;  %v1261_v63 = vadd.f32 %v153_v61, %v102_v58 }
 0x10c   :  { %160 = vrot.lane.b32.xlu0 %v131_v44, %s1142_s21  ;;  %190 = vrot.lane.b32.xlu1 %v128_v42, %s1140_s15  ;;  %v1005_v58 = vpack.i.bf16 %v1261_v63, %v1256_v60 }
 0x10d   :  { %166 = vrot.lane.b32.xlu2 %v128_v42, %s1143_s22 }
 0x114   :  { %168 = vrot.lane.b32.xlu0 %v131_v44, %s1143_s22  ;;  %295 = vrot.lane.b32.xlu1 %v131_v44, %s1140_s15 }
 0x115   :  { %164 = vrot.lane.b32.xlu2 %v131_v44, %s1141_s0 }
 0x15e   :  { %v159_v45 = vpop.permute.xlu2 %158 }
 0x15f   :  { %217 = vrot.lane.b32.xlu2 %v159_v45, %s1140_s15 }
 0x167   :  { %v167_v46 = vpop.permute.xlu2 %166 }
 0x168   :  { %269 = vrot.lane.b32.xlu0 %v167_v46, %s1140_s15 }
 0x16f   :  { %v165_v47 = vpop.permute.xlu2 %164 }
 0x170   :  { %347 = vrot.lane.b32.xlu1 %v165_v47, %s1140_s15 }
 0x176   :  { %v163_v48 = vpop.permute.xlu1 %162 }
 0x177   :  { %243 = vrot.lane.b32.xlu0 %v163_v48, %s1140_s15 }
 0x17e   :  { %v161_v49 = vpop.permute.xlu0 %160  ;;  %v191_v50 = vpop.permute.xlu1 %190 }
 0x17f   :  { %965 = vmatpush.xpose.msk.msra.mxu3 %vm192_vm3, %v191_v50  ;;  %321 = vrot.lane.b32.xlu2 %v161_v49, %s1140_s15 }
 0x182   :  { %966 = vmatmul.msk.f32.vlgmr.msra.gmra.mxu3 %vm192_vm3, %v128_v42 }
 0x186   :  { %v169_v51 = vpop.permute.xlu0 %168  ;;  %v296_v52 = vpop.permute.xlu1 %295 }
 0x187   :  { %973 = vmatpush.xpose.msk.msra.mxu2 %vm192_vm3, %v296_v52  ;;  %373 = vrot.lane.b32.xlu2 %v169_v51, %s1140_s15 }
 0x18a   :  { %974 = vmatmul.msk.f32.vlgmr.msra.gmra.mxu2 %vm192_vm3, %v131_v44 }
 0x1b9   :  { %v218_v53 = vpop.permute.xlu2 %217 }
 0x1ba   :  { %967 = vmatpush.xpose.msk.msrb.mxu3 %vm192_vm3, %v218_v53 }
 0x1bd   :  { %968 = vmatmul.msk.f32.vlgmr.msrb.gmra.mxu3 %vm192_vm3, %v159_v45 }
 0x1d9   :  { %v322_v55 = vpop.permute.xlu2 %321 }
 0x1da   :  { %v270_v57 = vpop.permute.xlu0 %269 }
 0x1db   :  { %971 = vmatpush.xpose.msk.msra.mxu3 %vm192_vm3, %v270_v57 }
 0x1de   :  { %972 = vmatmul.msk.f32.vlgmr.msra.gmra.mxu3 %vm192_vm3, %v167_v46 }
 0x1df   :  { %975 = vmatpush.xpose.msk.msrb.mxu3 %vm192_vm3, %v322_v55 }
 0x1e1   :  { %v374_v59 = vpop.permute.xlu2 %373 }
 0x1e2   :  { %v348_v62 = vpop.permute.xlu1 %347 }
 0x1e3   :  { %979 = vmatpush.xpose.msk.msra.mxu3 %vm192_vm3, %v374_v59  ;;  %977 = vmatpush.xpose.msk.msrb.mxu2 %vm192_vm3, %v348_v62 }
 0x1e6   :  { %976 = vmatmul.msk.f32.vlgmr.msrb.gmra.mxu3 %vm192_vm3, %v161_v49  ;;  %978 = vmatmul.msk.f32.vlgmr.msrb.gmra.mxu2 %vm192_vm3, %v165_v47 }
 0x1e7   :  { %626 = vmatpush.msra.mxu2 %v1256_v60 }
 0x1e9   :  { %718 = vmatpush.msrb.mxu2 %v1261_v63  ;;  %v244_v0 = vpop.permute.xlu0 %243 }
 0x1ea   :  { %969 = vmatpush.xpose.msk.msrb.mxu0 %vm192_vm3, %v244_v0 }
 0x1ed   :  { %970 = vmatmul.msk.f32.vlgmr.msrb.gmra.mxu0 %vm192_vm3, %v163_v48 }
 0x1ee   :  { %980 = vmatmul.msk.f32.vlgmr.msra.gmra.mxu3 %vm192_vm3, %v169_v51 }
 0x205   :  { %v214_v1 = vpop.f32.mrf.mxu3 }
 0x206   :  { %v399_v18 = vmul.f32 0.25, %v214_v1 }
 0x208   :  { %v408_v23 = vsel %vm407_vm4, %v399_v18, -inf }
 0x20d   :  { %v318_v5 = vpop.f32.mrf.mxu2 }
 0x20e   :  { %v403_v19 = vmul.f32 0.25, %v318_v5 }
 0x210   :  { %v420_v22 = vsel %vm407_vm4, %v403_v19, -inf }
 0x240   :  { %v240_v2 = vpop.f32.mrf.mxu3 }
 0x241   :  { %v400_v3 = vmul.f32 0.25, %v240_v2 }
 0x243   :  { %v411_v4 = vsel %vm407_vm4, %v400_v3, -inf }
 0x244   :  { %412 = vmax.xlane.f32.xlu0 %v411_v4 }
 0x261   :  { %v292_v6 = vpop.f32.mrf.mxu3 }
 0x262   :  { %v402_v7 = vmul.f32 0.25, %v292_v6 }
 0x264   :  { %v417_v8 = vsel %vm407_vm4, %v402_v7, -inf }
 0x265   :  { %418 = vmax.xlane.f32.xlu2 %v417_v8 }
 0x269   :  { %v344_v9 = vpop.f32.mrf.mxu3  ;;  %v370_v10 = vpop.f32.mrf.mxu2 }
 0x26a   :  { %v404_v11 = vmul.f32 0.25, %v344_v9  ;;  %v405_v12 = vmul.f32 0.25, %v370_v10  ;;  %v266_v13 = vpop.f32.mrf.mxu0 }
 0x26b   :  { %v401_v14 = vmul.f32 0.25, %v266_v13 }
 0x26c   :  { %v426_v15 = vsel %vm407_vm4, %v405_v12, -inf  ;;  %v423_v16 = vsel %vm407_vm4, %v404_v11, -inf }
 0x26d   :  { %427 = vmax.xlane.f32.xlu0 %v426_v15  ;;  %424 = vmax.xlane.f32.xlu2 %v423_v16  ;;  %v414_v17 = vsel %vm407_vm4, %v401_v14, -inf }
 0x26e   :  { %415 = vmax.xlane.f32.xlu1 %v414_v17 }
 0x271   :  { %v396_v20 = vpop.f32.mrf.mxu3 }
 0x272   :  { %v406_v21 = vmul.f32 0.25, %v396_v20 }
 0x274   :  { %v429_v24 = vsel %vm407_vm4, %v406_v21, -inf }
 0x275   :  { %421 = vmax.xlane.f32.xlu0 %v420_v22  ;;  %409 = vmax.xlane.f32.xlu2 %v408_v23 }
 0x276   :  { %430 = vmax.xlane.f32.xlu1 %v429_v24 }
 0x2b7   :  { %v413_v25 = vpop.xlane.xlu0 %412 }
 0x2b8   :  { %v433_v26 = vsub.f32 %v400_v3, %v413_v25 }
 0x2ba   :  { %v442_v27 = vmul.f32 1.442695, %v433_v26 }
 0x2bc   :  { %1020 = vpow2.f32 %v442_v27 }
 0x2c2   :  { %v1277_v28 = vpop.eup %1020 }
 0x2c3   :  { %v459_v29 = vsel %vm407_vm4, %v1277_v28, 0.0 }
 0x2c4   :  { %460 = vadd.xlane.f32.xlu1 %v459_v29 }
 0x2d8   :  { %v419_v31 = vpop.xlane.xlu2 %418 }
 0x2d9   :  { %v435_v32 = vsub.f32 %v402_v7, %v419_v31 }
 0x2db   :  { %v446_v34 = vmul.f32 1.442695, %v435_v32 }
 0x2dd   :  { %1022 = vpow2.f32 %v446_v34 }
 0x2e0   :  { %v425_v35 = vpop.xlane.xlu2 %424  ;;  %v428_v39 = vpop.xlane.xlu0 %427 }
 0x2e1   :  { %v437_v36 = vsub.f32 %v404_v11, %v425_v35  ;;  %v416_v37 = vpop.xlane.xlu1 %415  ;;  %v438_v45 = vsub.f32 %v405_v12, %v428_v39 }
 0x2e2   :  { %v434_v40 = vsub.f32 %v401_v14, %v416_v37 }
 0x2e3   :  { %v1281_v41 = vpop.eup %1022  ;;  %v450_v42 = vmul.f32 1.442695, %v437_v36  ;;  %v452_v46 = vmul.f32 1.442695, %v438_v45 }
 0x2e4   :  { %v444_v43 = vmul.f32 1.442695, %v434_v40  ;;  %v465_v44 = vsel %vm407_vm4, %v1281_v41, 0.0 }
 0x2e5   :  { %466 = vadd.xlane.f32.xlu0 %v465_v44  ;;  %1024 = vpow2.f32 %v450_v42 }
 0x2e6   :  { %1026 = vpow2.f32 %v444_v43 }
 0x2e7   :  { %1028 = vpow2.f32 %v452_v46 }
 0x2e8   :  { %v410_v59 = vpop.xlane.xlu2 %409  ;;  %v422_v62 = vpop.xlane.xlu0 %421 }
 0x2e9   :  { %v431_v47 = vpop.xlane.xlu1 %430  ;;  %v432_v61 = vsub.f32 %v399_v18, %v410_v59  ;;  %v436_v0 = vsub.f32 %v403_v19, %v422_v62 }
 0x2ea   :  { %v439_v48 = vsub.f32 %v406_v21, %v431_v47 }
 0x2eb   :  { %v1285_v49 = vpop.eup %1024  ;;  %v440_v1 = vmul.f32 1.442695, %v432_v61  ;;  %v448_v2 = vmul.f32 1.442695, %v436_v0 }
 0x2ec   :  { %v454_v50 = vmul.f32 1.442695, %v439_v48  ;;  %v1287_v51 = vpop.eup %1026  ;;  %v471_v52 = vsel %vm407_vm4, %v1285_v49, 0.0 }
 0x2ed   :  { %472 = vadd.xlane.f32.xlu1 %v471_v52  ;;  %v462_v53 = vsel %vm407_vm4, %v1287_v51, 0.0  ;;  %v1293_v54 = vpop.eup %1028 }
 0x2ee   :  { %1030 = vpow2.f32 %v454_v50  ;;  %463 = vadd.xlane.f32.xlu2 %v462_v53  ;;  %v474_v56 = vsel %vm407_vm4, %v1293_v54, 0.0 }
 0x2ef   :  { %1032 = vpow2.f32 %v440_v1 }
 0x2f0   :  { %1034 = vpow2.f32 %v448_v2 }
 0x2f4   :  { %v1295_v55 = vpop.eup %1030 }
 0x2f5   :  { %v477_v57 = vsel %vm407_vm4, %v1295_v55, 0.0  ;;  %v1306_v3 = vpop.eup %1032 }
 0x2f6   :  { %475 = vadd.xlane.f32.xlu2 %v474_v56  ;;  %478 = vadd.xlane.f32.xlu0 %v477_v57  ;;  %v456_v4 = vsel %vm407_vm4, %v1306_v3, 0.0  ;;  %v1310_v60 = vpop.eup %1034 }
 0x2f7   :  { %v468_v63 = vsel %vm407_vm4, %v1310_v60, 0.0 }
 0x306   :  { %1006 = vrot.lane.b32.xlu1 %v1005_v58, %s1142_s21  ;;  %s930_s21 = sshll.u32 %s1416_s6, 4  ;;  %s931_s21 = int_to_ptr.hbm [resolvable:$true] %s930_s21 }
 0x30a   :  { %1016 = vrot.lane.b32.xlu0 %v1005_v58, %s1143_s22 }
 0x30e   :  { %1011 = vrot.lane.b32.xlu2 %v1005_v58, %s1141_s0 }
 0x330   :  { %457 = vadd.xlane.f32.xlu1 %v456_v4 }
 0x334   :  { %469 = vadd.xlane.f32.xlu0 %v468_v63 }
 0x337   :  { %v461_v5 = vpop.xlane.xlu1 %460 }
 0x338   :  { %1036 = vrcp.f32 %v461_v5  ;;  %v506_v9 = vand.u32 2147483648, %v461_v5  ;;  %v504_v11 = vand.u32 2147483647, %v461_v5  ;;  %vm500_vm6 = vweird.f32 %v461_v5 }
 0x33a   :  { %v507_v13 = vor.u32 1.1754944e-38, %v506_v9  ;;  %vm505_vm8 = vcmp.eq.f32.partialorder %v504_v11, 8.507059e+37 }
 0x33e   :  { %v1037_v6 = vpop.eup %1036 }
 0x33f   :  { %v496_v7 = vmul.f32 %v1037_v6, %v461_v5  ;;  %vm501_vm5 = vweird.f32 %v1037_v6 }
 0x340   :  { %vm502_vm7 = vmor %vm500_vm6, %vm501_vm5 }
 0x341   :  { %v497_v8 = vsub.f32 1.0, %v496_v7 }
 0x343   :  { %v498_v10 = vmul.f32 %v1037_v6, %v497_v8 }
 0x345   :  { %v499_v12 = vadd.f32 %v1037_v6, %v498_v10 }
 0x347   :  { %v503_v14 = vsel %vm502_vm7, %v1037_v6, %v499_v12 }
 0x348   :  { %v508_v15 = vsel %vm505_vm8, %v507_v13, %v503_v14 }
 0x349   :  { %v1315_v16 = vmul.f32 %v1277_v28, %v508_v15 }
 0x34b   :  { %601 = vst.msk [vmem:[#allocation6 + $0x8] sm:$0xff] %vm407_vm4, %v1315_v16 }
 0x358   :  { %v467_v17 = vpop.xlane.xlu0 %466 }
 0x359   :  { %1038 = vrcp.f32 %v467_v17  ;;  %v536_v23 = vand.u32 2147483648, %v467_v17  ;;  %v534_v25 = vand.u32 2147483647, %v467_v17  ;;  %vm530_vm10 = vweird.f32 %v467_v17 }
 0x35b   :  { %v537_v27 = vor.u32 1.1754944e-38, %v536_v23  ;;  %vm535_vm12 = vcmp.eq.f32.partialorder %v534_v25, 8.507059e+37 }
 0x35f   :  { %v1039_v18 = vpop.eup %1038 }
 0x360   :  { %v526_v19 = vmul.f32 %v1039_v18, %v467_v17  ;;  %v473_v20 = vpop.xlane.xlu1 %472  ;;  %vm531_vm9 = vweird.f32 %v1039_v18 }
 0x361   :  { %1040 = vrcp.f32 %v473_v20  ;;  %v464_v22 = vpop.xlane.xlu2 %463  ;;  %vm532_vm11 = vmor %vm530_vm10, %vm531_vm9  ;;  %v566_v42 = vand.u32 2147483648, %v473_v20  ;;  %v564_v45 = vand.u32 2147483647, %v473_v20  ;;  %vm560_vm15 = vweird.f32 %v473_v20 }
 0x362   :  { %v527_v21 = vsub.f32 1.0, %v526_v19  ;;  %1042 = vrcp.f32 %v464_v22  ;;  %v521_v46 = vand.u32 2147483648, %v464_v22  ;;  %v519_v48 = vand.u32 2147483647, %v464_v22 }
 0x363   :  { %vm515_vm5 = vweird.f32 %v464_v22  ;;  %vm565_vm6 = vcmp.eq.f32.partialorder %v564_v45, 8.507059e+37 }
 0x364   :  { %v528_v24 = vmul.f32 %v1039_v18, %v527_v21  ;;  %v522_v57 = vor.u32 1.1754944e-38, %v521_v46  ;;  %vm520_vm8 = vcmp.eq.f32.partialorder %v519_v48, 8.507059e+37 }
 0x366   :  { %v529_v26 = vadd.f32 %v1039_v18, %v528_v24 }
 0x367   :  { %v1041_v28 = vpop.eup %1040 }
 0x368   :  { %v533_v29 = vsel %vm532_vm11, %v1039_v18, %v529_v26  ;;  %v1043_v31 = vpop.eup %1042  ;;  %v556_v32 = vmul.f32 %v1041_v28, %v473_v20  ;;  %vm561_vm13 = vweird.f32 %v1041_v28 }
 0x369   :  { %v538_v34 = vsel %vm535_vm12, %v537_v27, %v533_v29  ;;  %v511_v35 = vmul.f32 %v1043_v31, %v464_v22  ;;  %v479_v36 = vpop.xlane.xlu0 %478  ;;  %v1319_v37 = vpop.xlane.xlu2 %475  ;;  %vm516_vm14 = vweird.f32 %v1043_v31  ;;  %vm562_vm2 = vmor %vm560_vm15, %vm561_vm13 }
 0x36a   :  { %v1322_v39 = vmul.f32 %v1281_v41, %v538_v34  ;;  %v557_v40 = vsub.f32 1.0, %v556_v32  ;;  %1044 = vrcp.f32 %v479_v36  ;;  %v567_v41 = vor.u32 1.1754944e-38, %v566_v42  ;;  %vm517_vm7 = vmor %vm515_vm5, %vm516_vm14 }
 0x36b   :  { %v512_v43 = vsub.f32 1.0, %v511_v35  ;;  %1046 = vrcp.f32 %v1319_v37  ;;  %v594_v8 = vand.u32 2147483647, %v479_v36  ;;  %v596_v9 = vand.u32 2147483648, %v479_v36 }
 0x36c   :  { %603 = vst.msk [vmem:[#allocation6 + $0x18] sm:$0xff] %vm407_vm4, %v1322_v39  ;;  %v558_v44 = vmul.f32 %v1041_v28, %v557_v40  ;;  %v581_v12 = vand.u32 2147483648, %v1319_v37  ;;  %v579_v14 = vand.u32 2147483647, %v1319_v37  ;;  %vm590_vm11 = vweird.f32 %v479_v36 }
 0x36d   :  { %v513_v47 = vmul.f32 %v1043_v31, %v512_v43  ;;  %vm595_vm13 = vcmp.eq.f32.partialorder %v594_v8, 8.507059e+37  ;;  %vm575_vm14 = vweird.f32 %v1319_v37 }
 0x36e   :  { %v559_v50 = vadd.f32 %v1041_v28, %v558_v44  ;;  %v582_v19 = vor.u32 1.1754944e-38, %v581_v12 }
 0x36f   :  { %v514_v52 = vadd.f32 %v1043_v31, %v513_v47 }
 0x370   :  { %v1045_v53 = vpop.eup %1044  ;;  %v563_v56 = vsel %vm562_vm2, %v1041_v28, %v559_v50  ;;  %vm580_vm2 = vcmp.eq.f32.partialorder %v579_v14, 8.507059e+37 }
 0x371   :  { %v1047_v58 = vpop.eup %1046  ;;  %v568_v59 = vsel %vm565_vm6, %v567_v41, %v563_v56  ;;  %v518_v61 = vsel %vm517_vm7, %v1043_v31, %v514_v52  ;;  %v586_v62 = vmul.f32 %v1045_v53, %v479_v36  ;;  %v1012_v0 = vpop.permute.xlu2 %1011  ;;  %vm591_vm9 = vweird.f32 %v1045_v53 }
 0x372   :  { %v523_v1 = vsel %vm520_vm8, %v522_v57, %v518_v61  ;;  %v571_v2 = vmul.f32 %v1047_v58, %v1319_v37  ;;  %v1014_v4 = vunpack.i.h.bf16 %v1012_v0  ;;  %v1013_v5 = vunpack.i.l.bf16 %v1012_v0  ;;  %vm592_vm12 = vmor %vm590_vm11, %vm591_vm9 }
 0x373   :  { %v587_v63 = vsub.f32 1.0, %v586_v62  ;;  %v524_v6 = vmul.f32 %v1287_v51, %v523_v1  ;;  %v569_v7 = vmul.f32 %v1285_v49, %v568_v59  ;;  %vm576_vm10 = vweird.f32 %v1047_v58  ;;  %v832_v1 = vld [vmem:[%s1414_s4 + $0x30] sm:$0xff] }
 0x374   :  { %v572_v10 = vsub.f32 1.0, %v571_v2  ;;  %672 = vmatpush.msra.mxu0 %v1013_v5  ;;  %v597_v49 = vor.u32 1.1754944e-38, %v596_v9  ;;  %vm577_vm15 = vmor %vm575_vm14, %vm576_vm10  ;;  %v831_v2 = vld [vmem:[%s1414_s4 + $0x28] sm:$0xff]  ;;  %v828_v5 = vld [vmem:[%s1414_s4 + $0x10] sm:$0xff] }
 0x375   :  { %v588_v11 = vmul.f32 %v1045_v53, %v587_v63  ;;  %602 = vst.msk [vmem:[#allocation6 + $0x10] sm:$0xff] %vm407_vm4, %v524_v6  ;;  %983 = vmatmul.msk.f32.vlgmr.msra.gmra.mxu0 %vm407_vm4, %v524_v6  ;;  %v829_v63 = vld [vmem:[%s1414_s4 + $0x18] sm:$0xff]  ;;  %v827_v6 = vld [vmem:[%s1414_s4 + $0x8] sm:$0xff] }
 0x376   :  { %v573_v13 = vmul.f32 %v1047_v58, %v572_v10  ;;  %605 = vst.msk [vmem:[#allocation6 + $0x28] sm:$0xff] %vm407_vm4, %v569_v7  ;;  %764 = vmatpush.msrb.mxu0 %v1014_v4  ;;  %v830_v4 = vld [vmem:[%s1414_s4 + $0x20] sm:$0xff] }
 0x377   :  { %v589_v51 = vadd.f32 %v1045_v53, %v588_v11 }
 0x378   :  { %v574_v15 = vadd.f32 %v1047_v58, %v573_v13  ;;  %v1007_v17 = vpop.permute.xlu1 %1006 }
 0x379   :  { %v593_v18 = vsel %vm592_vm12, %v1045_v53, %v589_v51  ;;  %v1009_v20 = vunpack.i.h.bf16 %v1007_v17  ;;  %v1008_v21 = vunpack.i.l.bf16 %v1007_v17 }
 0x37a   :  { %v598_v22 = vsel %vm595_vm13, %v597_v49, %v593_v18  ;;  %v578_v23 = vsel %vm577_vm15, %v1047_v58, %v574_v15 }
 0x37b   :  { %v583_v24 = vsel %vm580_vm2, %v582_v19, %v578_v23  ;;  %649 = vmatpush.msrb.mxu3 %v1008_v21  ;;  %v599_v25 = vmul.f32 %v1295_v55, %v598_v22  ;;  %v823_v21 = vperm.slane %v1229_v38, 1 }
 0x37c   :  { %982 = vmatmul.msk.f32.vlgmr.msrb.gmra.mxu3 %vm407_vm4, %v1315_v16  ;;  %v1017_v26 = vpop.permute.xlu0 %1016  ;;  %v584_v27 = vmul.f32 %v1293_v54, %v583_v24 }
 0x37d   :  { %741 = vmatpush.msra.mxu3 %v1009_v20  ;;  %v1019_v28 = vunpack.i.h.bf16 %v1017_v26  ;;  %v1018_v29 = vunpack.i.l.bf16 %v1017_v26  ;;  %607 = vst.msk [vmem:[#allocation6 + $0x38] sm:$0xff] %vm407_vm4, %v599_v25  ;;  %v824_v22 = vadd.f32 %v823_v21, %v1213_v30  ;;  %v825_v26 = vadd.f32 %v823_v21, %v1220_v33 }
 0x37e   :  { %606 = vst.msk [vmem:[#allocation6 + $0x30] sm:$0xff] %vm407_vm4, %v584_v27  ;;  %987 = vmatmul.msk.f32.vlgmr.msrb.gmra.mxu0 %vm407_vm4, %v584_v27 }
 0x37f   :  { %695 = vmatpush.msrb.mxu1 %v1018_v29 }
 0x380   :  { %984 = vmatmul.msk.f32.vlgmr.msrb.gmra.mxu1 %vm407_vm4, %v1322_v39 }
 0x381   :  { %787 = vmatpush.msra.mxu1 %v1019_v28 }
 0x384   :  { %986 = vmatmul.msk.f32.vlgmr.msra.gmra.mxu3 %vm407_vm4, %v569_v7  ;;  %v826_v7 = vld [vmem:[%s1414_s4] sm:$0xff] }
 0x388   :  { %988 = vmatmul.msk.f32.vlgmr.msra.gmra.mxu1 %vm407_vm4, %v599_v25 }
 0x3a3   :  { %v458_v55 = vpop.xlane.xlu1 %457 }
 0x3a4   :  { %1048 = vrcp.f32 %v458_v55  ;;  %v489_v35 = vand.u32 2147483647, %v458_v55  ;;  %v491_v36 = vand.u32 2147483648, %v458_v55  ;;  %vm485_vm6 = vweird.f32 %v458_v55 }
 0x3a6   :  { %vm490_vm8 = vcmp.eq.f32.partialorder %v489_v35, 8.507059e+37  ;;  %v492_v43 = vor.u32 1.1754944e-38, %v491_v36 }
 0x3a7   :  { %v470_v54 = vpop.xlane.xlu0 %469 }
 0x3a8   :  { %1050 = vrcp.f32 %v470_v54  ;;  %v551_v44 = vand.u32 2147483648, %v470_v54  ;;  %v549_v47 = vand.u32 2147483647, %v470_v54  ;;  %vm545_vm10 = vweird.f32 %v470_v54 }
 0x3aa   :  { %v1049_v16 = vpop.eup %1048  ;;  %v552_v52 = vor.u32 1.1754944e-38, %v551_v44  ;;  %vm550_vm12 = vcmp.eq.f32.partialorder %v549_v47, 8.507059e+37 }
 0x3ab   :  { %v481_v31 = vmul.f32 %v1049_v16, %v458_v55  ;;  %vm486_vm5 = vweird.f32 %v1049_v16  ;;  %v1145_v55 = vmov 32.0  }
 0x3ac   :  { %vm487_vm7 = vmor %vm485_vm6, %vm486_vm5  ;;  %1052 = vrcp.f32 %v1145_v55 }
 0x3ad   :  { %v482_v32 = vsub.f32 1.0, %v481_v31 }
 0x3ae   :  { %v1051_v34 = vpop.eup %1050 }
 0x3af   :  { %v483_v37 = vmul.f32 %v1049_v16, %v482_v32  ;;  %v541_v40 = vmul.f32 %v1051_v34, %v470_v54  ;;  %vm546_vm9 = vweird.f32 %v1051_v34 }
 0x3b0   :  { %vm547_vm11 = vmor %vm545_vm10, %vm546_vm9 }
 0x3b1   :  { %v484_v42 = vadd.f32 %v1049_v16, %v483_v37  ;;  %v542_v39 = vsub.f32 1.0, %v541_v40 }
 0x3b2   :  { %v1053_v54 = vpop.eup %1052 }
 0x3b3   :  { %v488_v45 = vsel %vm487_vm7, %v1049_v16, %v484_v42  ;;  %v543_v46 = vmul.f32 %v1051_v34, %v542_v39  ;;  %v872_v16 = vmul.f32 32.0, %v1053_v54 }
 0x3b4   :  { %v493_v48 = vsel %vm490_vm8, %v492_v43, %v488_v45 }
 0x3b5   :  { %v544_v50 = vadd.f32 %v1051_v34, %v543_v46  ;;  %v494_v41 = vmul.f32 %v1306_v3, %v493_v48  ;;  %v873_v31 = vsub.f32 1.0, %v872_v16 }
 0x3b7   :  { %v548_v53 = vsel %vm547_vm11, %v1051_v34, %v544_v50  ;;  %600 = vst.msk [vmem:[#allocation6] sm:$0xff] %vm407_vm4, %v494_v41  ;;  %981 = vmatmul.msk.f32.vlgmr.msra.gmra.mxu2 %vm407_vm4, %v494_v41  ;;  %v874_v32 = vmul.f32 %v1053_v54, %v873_v31 }
 0x3b8   :  { %v553_v56 = vsel %vm550_vm12, %v552_v52, %v548_v53 }
 0x3b9   :  { %v554_v57 = vmul.f32 %v1310_v60, %v553_v56  ;;  %v833_v60 = vld [vmem:[%s1414_s4 + $0x38] sm:$0xff]  ;;  %v875_v34 = vadd.f32 %v1053_v54, %v874_v32  ;;  %s1146_s4 = smov [#allocation6]  }
 0x3ba   :  { %848 = vmatpush.msra.mxu2 %v833_v60  ;;  %s941_s14 = sshll.u32 %s1146_s4, 4  ;;  %s942_s14 = int_to_ptr.vmem [resolvable:$true] %s941_s14 }
 0x3bb   :  { %604 = vst.msk [vmem:[#allocation6 + $0x20] sm:$0xff] %vm407_vm4, %v554_v57 }
 0x3bc   :  { %849 = vmatpush.msra.mxu2 %v832_v1  ;;  %949 = dma.vmem_to_hbm [thread:$0]  %s942_s14, 1024, %s944_s16, [#allocation7], %s1147_s17, %s1147_s17, %s1148_s18  }
 0x3be   :  { %850 = vmatpush.msra.mxu2 %v831_v2 }
 0x3bf   :  { %985 = vmatmul.msk.f32.vlgmr.msrb.gmra.mxu2 %vm407_vm4, %v554_v57  ;;  %vm820_vm4 = vcmask 392192  }
 0x3c0   :  { %851 = vmatpush.msra.mxu2 %v830_v4 }
 0x3c2   :  { %852 = vmatpush.msra.mxu2 %v829_v63 }
 0x3c4   :  { %853 = vmatpush.msra.mxu2 %v828_v5 }
 0x3c6   :  { %854 = vmatpush.msra.mxu2 %v827_v6 }
 0x3c8   :  { %855 = vmatpush.msra.mxu2 %v826_v7 }
 0x3f2   :  { %v674_v58 = vpop.f32.mrf.mxu0 }
 0x3f3   :  { %802 = vrot.lane.b32.xlu2 %v674_v58, %s1139_s12  ;;  %v916_v58 = vperm.slane %v1229_v38, 2 }
 0x3fb   :  { %v766_v0 = vpop.f32.mrf.mxu0 }
 0x3fd   :  { %v697_v59 = vpop.f32.mrf.mxu1 }
 0x3ff   :  { %v651_v3 = vpop.f32.mrf.mxu3 }
 0x400   :  { %794 = vrot.lane.b32.xlu2 %v651_v3, %s1138_s30 }
 0x405   :  { %v789_v61 = vpop.f32.mrf.mxu1 }
 0x406   :  { %812 = vrot.lane.b32.xlu1 %v789_v61, %s1144_s5  ;;  %v919_v61 = vperm.slane %v1229_v38, 3 }
 0x407   :  { %v743_v62 = vpop.f32.mrf.mxu3 }
 0x408   :  { %810 = vrot.lane.b32.xlu2 %v697_v59, %s1144_s5 }
 0x410   :  { %796 = vrot.lane.b32.xlu2 %v743_v62, %s1138_s30 }
 0x418   :  { %804 = vrot.lane.b32.xlu2 %v766_v0, %s1139_s12 }
 0x43a   :  { %v628_v10 = vpop.f32.mrf.mxu2 }
 0x442   :  { %v720_v15 = vpop.f32.mrf.mxu2 }
 0x44d   :  { %v803_v8 = vpop.permute.xlu2 %802 }
 0x45a   :  { %v795_v9 = vpop.permute.xlu2 %794 }
 0x45b   :  { %v816_v11 = vsel %vm192_vm3, %v628_v10, %v795_v9 }
 0x45c   :  { %v818_v12 = vsel %vm65_vm0, %v816_v11, %v803_v8 }
 0x462   :  { %v811_v13 = vpop.permute.xlu2 %810 }
 0x463   :  { %v821_v14 = vsel %vm820_vm4, %v818_v12, %v811_v13 }
 0x464   :  { %989 = vmatmul.msk.f32.vlgmr.msra.gmra.mxu2 %vm68_vm1, %v821_v14 }
 0x46a   :  { %v797_v51 = vpop.permute.xlu2 %796 }
 0x46b   :  { %v817_v17 = vsel %vm192_vm3, %v720_v15, %v797_v51 }
 0x472   :  { %v805_v49 = vpop.permute.xlu2 %804 }
 0x473   :  { %v819_v18 = vsel %vm65_vm0, %v817_v17, %v805_v49 }
 0x478   :  { %v813_v19 = vpop.permute.xlu1 %812 }
 0x479   :  { %v822_v20 = vsel %vm820_vm4, %v819_v18, %v813_v19 }
 0x47a   :  { %990 = vmatmul.msk.f32.gmra.mxu2 %vm68_vm1, %v822_v20  ;;  %vm876_vm1 = vweird.f32 %v1053_v54 }
 0x47b   :  { %v877_v30 = vsel %vm876_vm1, %v1053_v54, %v875_v34 }
 0x4e7   :  { %v857_v23 = vpop.f32.mrf.mxu2 }
 0x4e8   :  { %v863_v24 = vadd.f32 %v857_v23, %v824_v22 }
 0x4ea   :  { %v865_v25 = vsel %vm65_vm0, %v863_v24, 0.0 }
 0x4eb   :  { %866 = vadd.xlane.f32.xlu0 %v865_v25 }
 0x4fd   :  { %v860_v27 = vpop.f32.mrf.mxu2 }
 0x4fe   :  { %v864_v28 = vadd.f32 %v860_v27, %v825_v26 }
 0x500   :  { %v868_v29 = vsel %vm65_vm0, %v864_v28, 0.0 }
 0x501   :  { %869 = vadd.xlane.f32.xlu2 %v868_v29 }
 0x55e   :  { %v867_v35 = vpop.xlane.xlu0 %866 }
 0x55f   :  { %v878_v36 = vmul.f32 %v877_v30, %v867_v35 }
 0x561   :  { %v880_v37 = vsub.f32 %v863_v24, %v878_v36 }
 0x563   :  { %v882_v40 = vmul.f32 %v880_v37, %v880_v37 }
 0x565   :  { %v884_v33 = vsel %vm65_vm0, %v882_v40, 0.0 }
 0x566   :  { %885 = vadd.xlane.f32.xlu0 %v884_v33 }
 0x574   :  { %v870_v42 = vpop.xlane.xlu2 %869 }
 0x575   :  { %v879_v39 = vmul.f32 %v877_v30, %v870_v42 }
 0x577   :  { %v881_v43 = vsub.f32 %v864_v28, %v879_v39 }
 0x579   :  { %v883_v44 = vmul.f32 %v881_v43, %v881_v43 }
 0x57b   :  { %v887_v45 = vsel %vm65_vm0, %v883_v44, 0.0 }
 0x57c   :  { %888 = vadd.xlane.f32.xlu0 %v887_v45 }
 0x5d9   :  { %v886_v46 = vpop.xlane.xlu0 %885 }
 0x5da   :  { %v890_v47 = vmul.f32 %v886_v46, %v877_v30 }
 0x5dc   :  { %v892_v48 = vadd.f32 1e-05, %v890_v47 }
 0x5de   :  { %1054 = vrsqrt.f32 %v892_v48  ;;  %vm900_vm13 = vweird.f32 %v892_v48 }
 0x5e4   :  { %v1055_v50 = vpop.eup %1054 }
 0x5e5   :  { %v895_v41 = vmul.f32 %v1055_v50, %v892_v48  ;;  %vm901_vm3 = vweird.f32 %v1055_v50 }
 0x5e6   :  { %vm902_vm14 = vmor %vm900_vm13, %vm901_vm3 }
 0x5e7   :  { %v896_v52 = vmul.f32 %v1055_v50, %v895_v41 }
 0x5e9   :  { %v897_v53 = vmul.f32 0.5, %v896_v52 }
 0x5eb   :  { %v898_v56 = vsub.f32 1.5, %v897_v53 }
 0x5ed   :  { %v899_v57 = vmul.f32 %v1055_v50, %v898_v56 }
 0x5ef   :  { %v903_v59 = vsel %vm902_vm14, %v1055_v50, %v899_v57  ;;  %v889_v3 = vpop.xlane.xlu0 %888 }
 0x5f0   :  { %v914_v62 = vmul.f32 %v903_v59, %v880_v37  ;;  %v891_v0 = vmul.f32 %v889_v3, %v877_v30 }
 0x5f2   :  { %v917_v60 = vmul.f32 %v916_v58, %v914_v62  ;;  %v893_v1 = vadd.f32 1e-05, %v891_v0 }
 0x5f4   :  { %v920_v2 = vadd.f32 %v919_v61, %v917_v60  ;;  %1056 = vrsqrt.f32 %v893_v1  ;;  %vm910_vm2 = vweird.f32 %v893_v1 }
 0x5f6   :  { %922 = vst.msk [vmem:[#allocation5] sm:$0xff] %vm65_vm0, %v920_v2 }
 0x5fa   :  { %v1057_v4 = vpop.eup %1056 }
 0x5fb   :  { %v905_v63 = vmul.f32 %v1057_v4, %v893_v1  ;;  %vm911_vm15 = vweird.f32 %v1057_v4 }
 0x5fc   :  { %vm912_vm5 = vmor %vm910_vm2, %vm911_vm15 }
 0x5fd   :  { %v906_v5 = vmul.f32 %v1057_v4, %v905_v63 }
 0x5ff   :  { %v907_v6 = vmul.f32 0.5, %v906_v5 }
 0x601   :  { %v908_v7 = vsub.f32 1.5, %v907_v6 }
 0x603   :  { %v909_v8 = vmul.f32 %v1057_v4, %v908_v7 }
 0x605   :  { %v913_v9 = vsel %vm912_vm5, %v1057_v4, %v909_v8 }
 0x606   :  { %v915_v10 = vmul.f32 %v913_v9, %v881_v43 }
 0x608   :  { %v918_v38 = vmul.f32 %v916_v58, %v915_v10 }
 0x60a   :  { %v921_v11 = vadd.f32 %v919_v61, %v918_v38 }
 0x60c   :  { %923 = vst.msk [vmem:[#allocation5 + $0x8] sm:$0xff] %vm65_vm0, %v921_v11 }
 0x60d   :  { %936 = dma.vmem_to_hbm [thread:$0]  %s929_s19, 256, %s931_s21, [#allocation4], %s1147_s17, %s1147_s17, %s1148_s18  }
 0x60e   :  { %1132 = dma.done.wait [#allocation4], 256  }
 0x60f   :  { %1133 = vsyncadd [#allocation4], 4294967040 }
 0x610   :  { %1134 = dma.done.wait [#allocation7], 1024  }
 0x611   :  { %1135 = vsyncadd [#allocation7], 4294966272 }
 0x612   :  { %958 = vsyncpa [#allocation3], 1 }
 0x613   :  { %959 = vsyncpa [#allocation4], 1 }
 0x614   :  { %960 = vsyncpa [#allocation7], 1 }

</bundles_post_ra>
